<compile_context>
chip_gen: v7x
topology: tpu7x:2x2x1
jax: 0.10.0
libtpu: 0.0.40
codegen_flags: <defaults>
</compile_context>

<pallas_src>
from collections import OrderedDict
from typing import Any, Dict, NamedTuple, Tuple

import jax
import jax.numpy as jnp
from jax.experimental import pallas as pl
from jax.experimental.pallas import tpu as pltpu


# ------------------------------------------------------------------
# Pallas kernel: tiled  y = (x @ W + b) * scale  with f32 accumulation
# ------------------------------------------------------------------
def _linear_kernel(scale_ref, x_ref, w_ref, b_ref, o_ref, acc_ref):
    # scale_ref: (1,1) f32 in SMEM
    # x_ref:  (TM, TK)  compute dtype (bf16)
    # w_ref:  (TK, TN)  compute dtype (bf16)
    # b_ref:  (1, TN)   f32
    # o_ref:  (TM, TN)  out dtype
    # acc_ref:(TM, TN)  f32 VMEM scratch (persists across the K grid axis)
    k = pl.program_id(2)

    @pl.when(k == 0)
    def _init():
        acc_ref[...] = jnp.zeros_like(acc_ref)

    acc_ref[...] += jnp.dot(
        x_ref[...], w_ref[...], preferred_element_type=jnp.float32
    )

    @pl.when(k == pl.num_programs(2) - 1)
    def _finalize():
        # bias + scale applied once, in f32, on the accumulator.
        o_ref[...] = ((acc_ref[...] + b_ref[...]) * scale_ref[0, 0]).astype(
            o_ref.dtype
        )


# ------------------------------------------------------------------
# Tiling helpers
# ------------------------------------------------------------------
def _round_up(x: int, m: int) -> int:
    return ((x + m - 1) // m) * m


def _cdiv(a: int, b: int) -> int:
    return (a + b - 1) // b


def _pick_tile(dim: int, max_tile: int, align: int) -> int:
    """Tile size <= max_tile (aligned) that minimizes padding of `dim`."""
    if dim <= max_tile:
        return _round_up(max(dim, 1), align)
    n_tiles = _cdiv(dim, max_tile)
    return _round_up(_cdiv(dim, n_tiles), align)


class LinearParams(NamedTuple):
    """Pre-padded / pre-cast parameters, built once at module init."""
    w_p: jax.Array   # (Kp, Np) compute dtype (bf16)
    b_p: jax.Array   # (1, Np)  f32
    d_in: int
    d_out: int
    tk: int
    tn: int


def make_linear_params(
    w: jax.Array,
    b: jax.Array,
    *,
    compute_dtype=jnp.bfloat16,
    max_tk: int = 2048,
    max_tn: int = 512,
) -> LinearParams:
    d_in, d_out = w.shape
    assert b.shape == (d_out,), (b.shape, d_out)
    # N / K tiles are a property of the layer, not the batch -> fixed at init.
    tk = _pick_tile(d_in, max_tk, 128)
    tn = _pick_tile(d_out, max_tn, 128)
    kp = _round_up(d_in, tk)
    np_ = _round_up(d_out, tn)
    # One-time pad + cast (zeros along K contribute nothing to the matmul).
    w_p = jnp.pad(w.astype(compute_dtype), ((0, kp - d_in), (0, np_ - d_out)))
    b_p = jnp.pad(
        b.astype(jnp.float32).reshape(1, d_out), ((0, 0), (0, np_ - d_out))
    )
    return LinearParams(w_p=w_p, b_p=b_p, d_in=d_in, d_out=d_out, tk=tk, tn=tn)


def pallas_linear(
    x: jax.Array,
    params: LinearParams,
    scale,
    *,
    compute_dtype=jnp.bfloat16,
    out_dtype=None,
) -> jax.Array:
    b_rows, d_in = x.shape
    assert d_in == params.d_in, (d_in, params.d_in)
    out_dtype = out_dtype if out_dtype is not None else x.dtype

    tk, tn = params.tk, params.tn
    kp, np_ = params.w_p.shape

    # ---- M tile: small batches keep one minimal tile (W streamed once); ----
    # ---- large batches right-size TM to minimize zero-row padding.       ----
    max_tm = 512 if b_rows >= 512 else 256
    tm = _pick_tile(b_rows, max_tm, 16)   # bf16 packs 16 sublanes per vreg
    mp = _round_up(b_rows, tm)

    # ---- activation cast/pad only when actually needed ----
    x_c = x if x.dtype == compute_dtype else x.astype(compute_dtype)
    if (mp, kp) != (b_rows, d_in):
        x_c = jnp.pad(x_c, ((0, mp - b_rows), (0, kp - d_in)))

    scale_arr = jnp.asarray(scale, dtype=jnp.float32).reshape(1, 1)

    grid = (mp // tm, np_ // tn, kp // tk)

    # ---- VMEM budget: 2x-buffered x/w/b/out blocks + f32 acc, +headroom; ----
    # ---- cap at 48 MiB so the config stays safe on v7x (64 MiB VMEM).    ----
    out_itemsize = jnp.dtype(out_dtype).itemsize
    in_itemsize = jnp.dtype(compute_dtype).itemsize
    footprint = (
        2 * tm * tk * in_itemsize      # x double buffer
        + 2 * tk * tn * in_itemsize    # w double buffer
        + 2 * 1 * tn * 4               # bias double buffer
        + 2 * tm * tn * out_itemsize   # out double buffer
        + tm * tn * 4                  # f32 accumulator scratch
    )
    vmem_limit = min(max(footprint + (8 << 20), 32 << 20), 48 << 20)

    out_p = pl.pallas_call(
        _linear_kernel,
        out_shape=jax.ShapeDtypeStruct((mp, np_), out_dtype),
        grid=grid,
        in_specs=[
            # scalar scale: whole (1,1) array in SMEM
            pl.BlockSpec(memory_space=pltpu.MemorySpace.SMEM),
            pl.BlockSpec((tm, tk), lambda i, j, k: (i, k)),
            pl.BlockSpec((tk, tn), lambda i, j, k: (k, j)),
            pl.BlockSpec((1, tn), lambda i, j, k: (0, j)),
        ],
        out_specs=pl.BlockSpec((tm, tn), lambda i, j, k: (i, j)),
        scratch_shapes=[pltpu.VMEM((tm, tn), jnp.float32)],
        compiler_params=pltpu.CompilerParams(
            # M and N are independent (megacore-shardable on v7x); K is the
            # reduction axis carried by the accumulator scratch.
            dimension_semantics=("parallel", "parallel", "arbitrary"),
            vmem_limit_bytes=vmem_limit,
        ),
    )(scale_arr, x_c, params.w_p, params.b_p)

    if (mp, np_) != (b_rows, params.d_out):
        out_p = out_p[:b_rows, :params.d_out]
    return out_p


# ------------------------------------------------------------------
# JAX mirrors of the PyTorch wrapper machinery (pure Python glue —
# no tensor compute in the wrapper itself, matching the spec).
# ------------------------------------------------------------------
class PatchModuleKwargsHook:
    """Forward-pre-hook that injects externally routed kwargs."""

    def __init__(self) -> None:
        self.ext_kwargs: Dict[str, Any] = {}

    def __call__(self, module, args, kwargs) -> Tuple[Any, Dict[str, Any]]:
        kwargs.update(self.ext_kwargs)
        return (args, kwargs)


class InnerLinearModule:
    """Inner 'nn.Module' stand-in: forward(x, scale=1.0) -> (x @ W + b) * scale.

    The matmul / bias / scale hot path is the Pallas kernel above. Parameters
    are pre-cast + pre-padded ONCE at init (no per-call weight rewrite in HBM).
    Supports forward-pre-hooks with kwargs (like torch's register_forward_pre_hook).
    """

    def __init__(self, d_in: int, d_out: int, dtype=jnp.float32) -> None:
        # Deterministic parameter init (synthetic; no checkpoint load).
        kw, kb = jax.random.split(jax.random.PRNGKey(42))
        self.weight = (jax.random.normal(kw, (d_in, d_out), dtype) * 0.02).astype(dtype)
        self.bias = (jax.random.normal(kb, (d_out,), dtype) * 0.1).astype(dtype)
        # Kernel-ready (bf16, padded to tile multiples) parameter copies.
        self._lin_params = make_linear_params(self.weight, self.bias)
        self._forward_pre_hooks = []

    def register_forward_pre_hook(self, hook, with_kwargs: bool = False):
        assert with_kwargs, "only kwargs-style hooks supported here"
        self._forward_pre_hooks.append(hook)

    def __call__(self, **kwargs):
        args: Tuple = ()
        for hook in self._forward_pre_hooks:
            result = hook(self, args, kwargs)
            if result is not None:
                args, kwargs = result
        return self.forward(**kwargs)

    def forward(self, *, x: jax.Array, scale=1.0) -> jax.Array:
        # Precision contract: matmul runs in bf16 with f32 accumulation;
        # bias + scale epilogue is f32; output is x.dtype.
        return pallas_linear(x, self._lin_params, scale)


class RebatchAbleModuleWrapper:
    """JAX equivalent of the PyTorch RebatchAbleModuleWrapper.

    forward(**kwargs): kwargs whose names start with '{hook_id}_' are popped,
    the prefix removed, and routed into the corresponding hook's ext_kwargs;
    then the wrapped module is called with the remaining kwargs.
    """

    def __init__(self, module) -> None:
        self.module = module
        self.replaced_module_kwargs_hook_map: "OrderedDict[str, PatchModuleKwargsHook]" = OrderedDict()

    def forward(self, /, **kwargs):
        for hook_id, v in self.replaced_module_kwargs_hook_map.items():
            hook_kwarg_prefix = f"{hook_id}_"
            for arg_name in list(kwargs.keys()):
                if arg_name.startswith(hook_kwarg_prefix):
                    v.ext_kwargs[arg_name.removeprefix(hook_kwarg_prefix)] = kwargs.pop(arg_name)
        return self.module(**kwargs)

    __call__ = forward

    def register_forward_ext_kwargs_hook(self, hook_id):
        if hook_id in self.replaced_module_kwargs_hook_map:
            raise Exception(f"hook_id {hook_id} already registered")
        hook = PatchModuleKwargsHook()
        self.replaced_module_kwargs_hook_map[hook_id] = hook

    def apply_forward_ext_kwargs_hook(self, module, hook_id):
        ext_kwargs_hook = self.replaced_module_kwargs_hook_map.get(hook_id, None)
        if ext_kwargs_hook is None:
            raise Exception(f"module_ext_kwargs_hook_id {hook_id} not registered")
        module.register_forward_pre_hook(ext_kwargs_hook, with_kwargs=True)


# ------------------------------------------------------------------
# Demo / smoke test
# ------------------------------------------------------------------
if __name__ == "__main__":
    # Small, deliberately ragged shapes: exercises the pad-to-tile path
    # (B=12 -> TM=16, D_IN=96 -> TK=128, D_OUT=80 -> TN=128).
    B, D_IN, D_OUT = 12, 96, 80

    key = jax.random.PRNGKey(0)
    x = jax.random.normal(key, (B, D_IN), jnp.float32)

    inner = InnerLinearModule(D_IN, D_OUT)
    wrapper = RebatchAbleModuleWrapper(inner)

    # Register a hook and attach it to the inner module, mirroring the
    # PyTorch usage pattern of the wrapper.
    wrapper.register_forward_ext_kwargs_hook("myhook")
    wrapper.apply_forward_ext_kwargs_hook(inner, "myhook")

    # 'myhook_scale' gets stripped of its prefix and routed into the inner
    # module's forward as `scale` via the forward-pre-hook.
    out = wrapper(x=x, myhook_scale=2.0)
    out = jax.block_until_ready(out)

    # References for the routed forward.
    # The kernel does the matmul in bf16 with f32 accumulation, so compare
    # against the same-precision reference tightly, and against the pure-f32
    # reference with a bf16-sized tolerance.
    ref_bf16 = (
        jnp.dot(
            x.astype(jnp.bfloat16),
            inner.weight.astype(jnp.bfloat16),
            preferred_element_type=jnp.float32,
        )
        + inner.bias[None, :]
    ) * 2.0
    ref_f32 = (x @ inner.weight + inner.bias[None, :]) * 2.0

    assert out.shape == (B, D_OUT), out.shape
    assert jnp.allclose(out, ref_bf16, atol=1e-3, rtol=1e-3), "mismatch vs bf16 reference"
    assert jnp.allclose(out, ref_f32, atol=3e-2, rtol=3e-2), "mismatch vs f32 reference"

    print("KERNEL_OK")
</pallas_src>

<mosaic_0001>
module attributes {stable_mosaic.version = 11 : i64} {
  func.func @_linear_kernel(%arg0: i32, %arg1: i32, %arg2: i32, %arg3: memref<1x1xf32, #tpu.memory_space<smem>>, %arg4: memref<16x128xbf16, #tpu.memory_space<vmem>>, %arg5: memref<128x128xbf16, #tpu.memory_space<vmem>>, %arg6: memref<1x128xf32, #tpu.memory_space<vmem>>, %arg7: memref<16x128xf32, #tpu.memory_space<vmem>>, %arg8: memref<16x128xf32, #tpu.memory_space<vmem>>) attributes {dimension_semantics = [#tpu.dimension_semantics<parallel>, #tpu.dimension_semantics<parallel>, #tpu.dimension_semantics<arbitrary>], iteration_bounds = array<i64: 1, 1, 1>, scalar_prefetch = 0 : i64, scratch_operands = 1 : i64, tpu.core_type = #tpu.core_type<tc>, window_params = [{transform_indices = @transform_0, window_bounds = array<i64: 1, 1>}, {transform_indices = @transform_1, window_bounds = array<i64: 16, 128>}, {transform_indices = @transform_2, window_bounds = array<i64: 128, 128>}, {transform_indices = @transform_3, window_bounds = array<i64: 1, 128>}, {transform_indices = @transform_4, window_bounds = array<i64: 16, 128>}]} {
    %c0_i32 = arith.constant 0 : i32
    %0 = arith.cmpi eq, %arg2, %c0_i32 : i32
    %1 = arith.extui %0 : i1 to i32
    %c0_i32_0 = arith.constant 0 : i32
    %2 = arith.cmpi ne, %1, %c0_i32_0 : i32
    scf.if %2 {
      %cst_10 = arith.constant 0.000000e+00 : f32
      %12 = vector.broadcast %cst_10 : f32 to vector<16x128xf32>
      %c0_11 = arith.constant 0 : index
      %c0_12 = arith.constant 0 : index
      %13 = vector.load %arg8[%c0_11, %c0_12] : memref<16x128xf32, #tpu.memory_space<vmem>>, vector<16x128xf32>
      tpu.vector_store %arg8[%c0_11, %c0_12], %12 {strides = array<i32>} : memref<16x128xf32, #tpu.memory_space<vmem>>, vector<16x128xf32>,
    } else {
    }
    %c0 = arith.constant 0 : index
    %c0_1 = arith.constant 0 : index
    %3 = vector.load %arg8[%c0, %c0_1] : memref<16x128xf32, #tpu.memory_space<vmem>>, vector<16x128xf32>
    %c0_2 = arith.constant 0 : index
    %c0_3 = arith.constant 0 : index
    %4 = vector.load %arg4[%c0_2, %c0_3] : memref<16x128xbf16, #tpu.memory_space<vmem>>, vector<16x128xbf16>
    %c0_4 = arith.constant 0 : index
    %c0_5 = arith.constant 0 : index
    %5 = vector.load %arg5[%c0_4, %c0_5] : memref<128x128xbf16, #tpu.memory_space<vmem>>, vector<128x128xbf16>
    %cst = arith.constant dense<0.000000e+00> : vector<16x128xf32>
    %6 = tpu.matmul %4, %5, %cst {dimension_numbers = #tpu.dot_dimension_numbers<[1], [0], [0], [1], [0, 0, 1, 1], [], []>} : vector<16x128xbf16>, vector<128x128xbf16>, vector<16x128xf32> -> vector<16x128xf32>
    %7 = arith.addf %3, %6 : vector<16x128xf32>
    %c0_6 = arith.constant 0 : index
    %c0_7 = arith.constant 0 : index
    %8 = vector.load %arg8[%c0_6, %c0_7] : memref<16x128xf32, #tpu.memory_space<vmem>>, vector<16x128xf32>
    tpu.vector_store %arg8[%c0_6, %c0_7], %7 {strides = array<i32>} : memref<16x128xf32, #tpu.memory_space<vmem>>, vector<16x128xf32>,
    %c0_i32_8 = arith.constant 0 : i32
    %9 = arith.cmpi eq, %arg2, %c0_i32_8 : i32
    %10 = arith.extui %9 : i1 to i32
    %c0_i32_9 = arith.constant 0 : i32
    %11 = arith.cmpi ne, %10, %c0_i32_9 : i32
    scf.if %11 {
      %c0_10 = arith.constant 0 : index
      %c0_11 = arith.constant 0 : index
      %12 = vector.load %arg8[%c0_10, %c0_11] : memref<16x128xf32, #tpu.memory_space<vmem>>, vector<16x128xf32>
      %c0_12 = arith.constant 0 : index
      %c0_13 = arith.constant 0 : index
      %13 = vector.load %arg6[%c0_12, %c0_13] : memref<1x128xf32, #tpu.memory_space<vmem>>, vector<1x128xf32>
      %14 = vector.broadcast %13 : vector<1x128xf32> to vector<16x128xf32>
      %15 = arith.addf %12, %14 : vector<16x128xf32>
      %c0_14 = arith.constant 0 : index
      %c0_15 = arith.constant 0 : index
      %16 = memref.load %arg3[%c0_14, %c0_15] : memref<1x1xf32, #tpu.memory_space<smem>>
      %17 = vector.broadcast %16 : f32 to vector<16x128xf32>
      %18 = arith.mulf %15, %17 : vector<16x128xf32>
      %c0_16 = arith.constant 0 : index
      %c0_17 = arith.constant 0 : index
      %19 = vector.load %arg7[%c0_16, %c0_17] : memref<16x128xf32, #tpu.memory_space<vmem>>, vector<16x128xf32>
      tpu.vector_store %arg7[%c0_16, %c0_17], %18 {strides = array<i32>} : memref<16x128xf32, #tpu.memory_space<vmem>>, vector<16x128xf32>,
    } else {
    }
    return
  }
  func.func @transform_0(%arg0: i32, %arg1: i32, %arg2: i32) -> (i32, i32) {
    %c0_i32 = arith.constant 0 : i32
    %c0_i32_0 = arith.constant 0 : i32
    %c0_i32_1 = arith.constant 0 : i32
    return %c0_i32, %c0_i32_0 : i32, i32
  }
  func.func @transform_1(%arg0: i32, %arg1: i32, %arg2: i32) -> (i32, i32) {
    %c0_i32 = arith.constant 0 : i32
    return %arg0, %arg2 : i32, i32
  }
  func.func @transform_2(%arg0: i32, %arg1: i32, %arg2: i32) -> (i32, i32) {
    %c0_i32 = arith.constant 0 : i32
    return %arg2, %arg1 : i32, i32
  }
  func.func @transform_3(%arg0: i32, %arg1: i32, %arg2: i32) -> (i32, i32) {
    %c0_i32 = arith.constant 0 : i32
    %c0_i32_0 = arith.constant 0 : i32
    return %c0_i32, %arg1 : i32, i32
  }
  func.func @transform_4(%arg0: i32, %arg1: i32, %arg2: i32) -> (i32, i32) {
    %c0_i32 = arith.constant 0 : i32
    return %arg0, %arg1 : i32, i32
  }
}

</mosaic_0001>

<bundles_post_ra>
// kernel: tpu_custom_call.1
= control target key start
LH: loop header
LB: loop body
LE: loop exit
PB: predicated region body
PF: predicated region fallthrough
CT: control target
= control target key end

     0   :  { %10 = vsyncpa [#allocation5], 0  ;;  %s416_s0 = inlined_call_operand.<no memory space> [shape: f32[1,1], index: 0, kind: input, shape index: {}]   ;;  %s417_s1 = inlined_call_operand.hbm [shape: bf16[16,128], index: 1, kind: input, shape index: {}]   ;;  %s418_s2 = inlined_call_operand.hbm [shape: bf16[128,128], index: 2, kind: input, shape index: {}]   ;;  %s419_s3 = inlined_call_operand.vmem [shape: f32[1,128], index: 3, kind: input, shape index: {}]   ;;  %s420_s4 = inlined_call_operand.hbm [shape: f32[16,128], index: 4, kind: output, shape index: {}]  }
   0x1   :  { %11 = vsyncpa [#allocation8], 0 }
   0x2   :  { %12 = vsyncpa [#allocation6], 0  ;;  %s340_s15 = smov [#allocation4]   ;;  %s268_s19 = scalar_lea.hbm %s417_s1, 128 }
   0x3   :  { %s20_s16 = sshll.u32 %s340_s15, 4  ;;  %p269_p0 = scmp.ne.s32.totalorder %s417_s1, %s268_s19  ;;  %s21_s16 = int_to_ptr.vmem [resolvable:$true] %s20_s16 }
   0x4   :  { %p272_p1 = scmp.lt.u32.totalorder %s268_s19, %s417_s1 }
   0x6   :  { %p274_p2 = pnand %p272_p1, %p269_p0 }
   0x8   :  { %277 = shalt.err (!%p274_p2)
}
   0x9   :  { %s278_s24 = scalar_lea.vmem %s21_s16, 128  ;;  %p283_p4 = scmp.lt.s32.totalorder %s21_s16, %s21_s16 }
   0xa   :  { %p279_p3 = scmp.ne.s32.totalorder %s21_s16, %s278_s24  ;;  %p284_p5 = scmp.lt.s32.totalorder %s278_s24, %s278_s24 }
   0xc   :  { %p285_p6 = por %p284_p5, %p283_p4 }
   0xe   :  { %p286_p7 = pnand %p285_p6, %p279_p3 }
  0x10   :  { %289 = shalt.err (!%p286_p7)
}
  0x11   :  { %s341_s25 = smov 64   ;;  %s342_s26 = smov 4  }
  0x12   :  { %26 = dma.hbm_to_vmem [thread:$0]  %s417_s1, 128, %s21_s16, [#allocation5], %s341_s25, %s341_s25, %s342_s26  }
  0x13   :  { %s343_s29 = smov [#allocation7]   ;;  %s290_s7 = scalar_lea.hbm %s418_s2, 1024 }
  0x14   :  { %s32_s30 = sshll.u32 %s343_s29, 4  ;;  %p291_p8 = scmp.ne.s32.totalorder %s418_s2, %s290_s7  ;;  %s33_s30 = int_to_ptr.vmem [resolvable:$true] %s32_s30 }
  0x15   :  { %p294_p9 = scmp.lt.u32.totalorder %s290_s7, %s418_s2 }
  0x17   :  { %p296_p10 = pnand %p294_p9, %p291_p8 }
  0x19   :  { %299 = shalt.err (!%p296_p10)
}
  0x1a   :  { %s300_s12 = scalar_lea.vmem %s33_s30, 1024  ;;  %p305_p12 = scmp.lt.s32.totalorder %s33_s30, %s33_s30 }
  0x1b   :  { %p301_p11 = scmp.ne.s32.totalorder %s33_s30, %s300_s12  ;;  %p306_p13 = scmp.lt.s32.totalorder %s300_s12, %s300_s12 }
  0x1d   :  { %p307_p0 = por %p306_p13, %p305_p12 }
  0x1f   :  { %p308_p1 = pnand %p307_p0, %p301_p11 }
  0x21   :  { %311 = shalt.err (!%p308_p1)
}
  0x22   :  { %38 = dma.hbm_to_vmem [thread:$0]  %s418_s2, 1024, %s33_s30, [#allocation8], %s341_s25, %s341_s25, %s342_s26  }
  0x23   :  { %334 = dma.done.wait [#allocation5], 128  }
  0x24   :  { %335 = vsyncadd [#allocation5], 4294967168 }
  0x25   :  { %336 = dma.done.wait [#allocation8], 1024  }
  0x26   :  { %337 = vsyncadd [#allocation8], 4294966272  ;;  %v344_v0 = vmov 0.0   ;;  %vm345_vm0 = vmmov 0   ;;  %v259_v1 = vld [vmem:[#allocation7] sm:$0xff]   ;;  %v260_v2 = vld [vmem:[#allocation7 + $0x8] sm:$0xff]   ;;  %v188_v12 = vstv %s416_s0 }
  0x27   :  { %230 = vmatprep.subr.bf16.mxu0 %v344_v0  ;;  %246 = vmatprep.mubr.msk.bf16.mxu0 %vm345_vm0, %v344_v0  ;;  %v261_v3 = vld [vmem:[#allocation7 + $0x10] sm:$0xff]   ;;  %v262_v4 = vld [vmem:[#allocation7 + $0x18] sm:$0xff]   ;;  %v263_v5 = vld [vmem:[#allocation7 + $0x20] sm:$0xff]   ;;  %s346_s17 = smov [#allocation9]  }
  0x28   :  { %231 = vmatpush3.bf16.msra.mxu0 %v259_v1  ;;  %v264_v6 = vld [vmem:[#allocation7 + $0x28] sm:$0xff]   ;;  %v265_v7 = vld [vmem:[#allocation7 + $0x30] sm:$0xff]   ;;  %v266_v8 = vld [vmem:[#allocation7 + $0x38] sm:$0xff]   ;;  %s198_s18 = sshll.u32 %s346_s17, 4  ;;  %s199_s18 = int_to_ptr.vmem [resolvable:$true] %s198_s18 }
  0x29   :  { %232 = vmatprep.subr.bf16.mxu0 %v344_v0  ;;  %v267_v9 = vld [vmem:[#allocation4] sm:$0xff]   ;;  %s312_s19 = scalar_lea.vmem %s199_s18, 256  ;;  %p317_p3 = scmp.lt.s32.totalorder %s199_s18, %s199_s18 }
  0x2a   :  { %v220_v10 = vld [vmem:[%s419_s3] ss:$0 sm:$0xff]  ;;  %p313_p2 = scmp.ne.s32.totalorder %s199_s18, %s312_s19  ;;  %p318_p4 = scmp.lt.s32.totalorder %s312_s19, %s312_s19 }
  0x2c   :  { %233 = vmatpush3.bf16.msra.mxu0 %v260_v2  ;;  %p319_p5 = por %p318_p4, %p317_p3 }
  0x2d   :  { %234 = vmatprep.subr.bf16.mxu0 %v344_v0 }
  0x2e   :  { %p320_p6 = pnand %p319_p5, %p313_p2 }
  0x30   :  { %235 = vmatpush3.bf16.msra.mxu0 %v261_v3 }
  0x31   :  { %236 = vmatprep.subr.bf16.mxu0 %v344_v0 }
  0x34   :  { %237 = vmatpush3.bf16.msra.mxu0 %v262_v4 }
  0x35   :  { %238 = vmatprep.subr.bf16.mxu0 %v344_v0 }
  0x38   :  { %239 = vmatpush3.bf16.msra.mxu0 %v263_v5 }
  0x39   :  { %240 = vmatprep.subr.bf16.mxu0 %v344_v0 }
  0x3c   :  { %241 = vmatpush3.bf16.msra.mxu0 %v264_v6 }
  0x3d   :  { %242 = vmatprep.subr.bf16.mxu0 %v344_v0 }
  0x40   :  { %243 = vmatpush3.bf16.msra.mxu0 %v265_v7 }
  0x41   :  { %244 = vmatprep.subr.bf16.mxu0 %v344_v0 }
  0x44   :  { %245 = vmatpush3.bf16.msra.mxu0 %v266_v8 }
  0x47   :  { %247 = vmatmul.mubr.bf16.vlgmr.msra.gmra.mrb[0].mxu0 %v267_v9 }
 0x11a   :  { %v162_v11 = vpop.f32.mrb[0].mxu0 }
 0x11b   :  { %v185_v13 = vadd.f32 %v220_v10, %v162_v11  ;;  %v248_v14 = vpop.f32.mrb[1].mxu0 }
 0x11c   :  { %v165_v15 = vpop.f32.mrb[2].mxu0 }
 0x11d   :  { %v189_v16 = vmul.f32 %v188_v12, %v185_v13  ;;  %v186_v17 = vadd.f32 %v220_v10, %v165_v15  ;;  %v249_v18 = vpop.f32.mrb[3].mxu0 }
 0x11f   :  { %191 = vst [vmem:[#allocation9] sm:$0xff] %v189_v16  ;;  %v190_v19 = vmul.f32 %v188_v12, %v186_v17 }
 0x121   :  { %192 = vst [vmem:[#allocation9 + $0x8] sm:$0xff] %v190_v19 }
 0x122   :  { %323 = shalt.err (!%p320_p6)
}
 0x123   :  { %s324_s20 = scalar_lea.hbm %s420_s4, 256 }
 0x124   :  { %p325_p7 = scmp.ne.s32.totalorder %s420_s4, %s324_s20  ;;  %p328_p8 = scmp.lt.u32.totalorder %s324_s20, %s420_s4 }
 0x126   :  { %p330_p9 = pnand %p328_p8, %p325_p7 }
 0x128   :  { %333 = shalt.err (!%p330_p9)
}
 0x129   :  { %s347_s25 = smov 128   ;;  %s348_s26 = smov 8  }
 0x12a   :  { %204 = dma.vmem_to_hbm [thread:$0]  %s199_s18, 256, %s420_s4, [#allocation6], %s347_s25, %s347_s25, %s348_s26  }
 0x12b   :  { %338 = dma.done.wait [#allocation6], 256  }
 0x12c   :  { %339 = vsyncadd [#allocation6], 4294967040 }
 0x12d   :  { %208 = vsyncpa [#allocation5], 1 }
 0x12e   :  { %209 = vsyncpa [#allocation8], 1 }
 0x12f   :  { %210 = vsyncpa [#allocation6], 1 }

</bundles_post_ra>
